<compile_context>
chip_gen: v5e
topology: v5e:2x2
jax: 0.10.0
libtpu: 0.0.40
codegen_flags: <defaults>
</compile_context>

<pallas_src>
import jax
import jax.numpy as jnp
from jax.experimental import pallas as pl
from jax.experimental.pallas import tpu as pltpu  # noqa: F401  (kept for TPU-specific knobs)

STRIDE = 4
PAD = 1
K = 3
C_IN = 76
C_OUT = 19
NEG_SLOPE = -0.355
NW = C_OUT * STRIDE * STRIDE  # 304 output columns (full SxS stride cell per channel)


def _fused_kernel(a_ref, b_ref, bias_ref, o_ref):
    # (M, C_in) @ (C_in, C_out*S*S) on the MXU (f32, f32 accumulation),
    # then bias + leaky-where + abs epilogue on the VPU, stored directly.
    v = jnp.dot(a_ref[...], b_ref[...], preferred_element_type=jnp.float32)
    v = v + bias_ref[...]                            # (M, NW) + (1, NW) broadcast
    lv = jnp.where(v > 0, v, v * NEG_SLOPE)
    o_ref[...] = jnp.abs(lv)


def conv_transpose_model(x, weight, bias):
    N, Cin, H, W = x.shape
    assert Cin == C_IN and weight.shape == (C_IN, C_OUT, K, K)
    assert STRIDE >= K, "non-overlap lowering requires stride >= kernel size"
    H_out = (H - 1) * STRIDE - 2 * PAD + K
    W_out = (W - 1) * STRIDE - 2 * PAD + K

    M = N * H * W
    a = jnp.transpose(x, (0, 2, 3, 1)).reshape(M, Cin)            # (M, C_in)

    # B widened to the full stride cell: weight in the top-left KxK, zeros in the gaps.
    b_wide = jnp.zeros((Cin, C_OUT, STRIDE, STRIDE), x.dtype)
    b_wide = b_wide.at[:, :, :K, :K].set(weight)
    b_wide = b_wide.reshape(Cin, NW)                              # (C_in, C_out*S*S)

    # Same bias_c for every column of channel c: gap columns become abs(leaky(bias_c)).
    bias_wide = jnp.broadcast_to(bias[:, None], (C_OUT, STRIDE * STRIDE)).reshape(1, NW)

    # Single block: everything (operands + output) is ~0.4 MiB, far under VMEM on all
    # generations (v5e/v6e 128 MiB, v7x 64 MiB).  No tiling, no megacore sharding.
    act = pl.pallas_call(
        _fused_kernel,
        out_shape=jax.ShapeDtypeStruct((M, NW), jnp.float32),
        grid=(1,),
        in_specs=[
            pl.BlockSpec((M, Cin), lambda i: (0, 0)),
            pl.BlockSpec((Cin, NW), lambda i: (0, 0)),
            pl.BlockSpec((1, NW), lambda i: (0, 0)),
        ],
        out_specs=pl.BlockSpec((M, NW), lambda i: (0, 0)),
    )(a, b_wide, bias_wide)

    # Scatter is now a pure reshape + transpose + crop (stride >= K => no overlap).
    full = act.reshape(N, H, W, C_OUT, STRIDE, STRIDE)
    full = jnp.transpose(full, (0, 3, 1, 4, 2, 5)).reshape(N, C_OUT, H * STRIDE, W * STRIDE)
    return full[:, :, PAD:PAD + H_out, PAD:PAD + W_out]


def reference(x, weight, bias):
    # Pure-JAX reference: conv_transpose = conv(dilated input, flipped kernel, pad=K-1-p).
    w_flip = weight[:, :, ::-1, ::-1]
    rhs = jnp.transpose(w_flip, (1, 0, 2, 3))  # (C_out, C_in, K, K)
    pad = K - 1 - PAD
    y = jax.lax.conv_general_dilated(
        x, rhs, window_strides=(1, 1),
        padding=((pad, pad), (pad, pad)),
        lhs_dilation=(STRIDE, STRIDE),
        dimension_numbers=("NCHW", "OIHW", "NCHW"),
        precision=jax.lax.Precision.HIGHEST)
    y = y + bias[None, :, None, None]
    return jnp.abs(jnp.where(y > 0, y, y * NEG_SLOPE))


if __name__ == "__main__":
    key = jax.random.PRNGKey(0)
    kx, kw, kb = jax.random.split(key, 3)

    # Shapes from the PyTorch module: x3 = torch.randn(2, 76, 3, 36).
    x = jax.random.normal(kx, (2, C_IN, 3, 36), dtype=jnp.float32)
    weight = 0.05 * jax.random.normal(kw, (C_IN, C_OUT, K, K), dtype=jnp.float32)
    bias = 0.05 * jax.random.normal(kb, (C_OUT,), dtype=jnp.float32)

    fn = jax.jit(conv_transpose_model)
    out = jax.block_until_ready(fn(x, weight, bias))
    assert out.shape == (2, C_OUT, 9, 141), out.shape

    ref = jax.block_until_ready(reference(x, weight, bias))
    assert jnp.allclose(out, ref, atol=1e-3, rtol=1e-3), \
        float(jnp.max(jnp.abs(out - ref)))

    print("KERNEL_OK")
</pallas_src>

<mosaic_0001>
module attributes {stable_mosaic.version = 11 : i64} {
  func.func @_fused_kernel(%arg0: i32, %arg1: memref<216x76xf32, #tpu.memory_space<vmem>>, %arg2: memref<76x304xf32, #tpu.memory_space<vmem>>, %arg3: memref<1x304xf32, #tpu.memory_space<vmem>>, %arg4: memref<216x304xf32, #tpu.memory_space<vmem>>) attributes {dimension_semantics = [#tpu.dimension_semantics<arbitrary>], iteration_bounds = array<i64: 1>, scalar_prefetch = 0 : i64, scratch_operands = 0 : i64, tpu.core_type = #tpu.core_type<tc>, window_params = [{pipeline_mode = #tpu.pipeline_mode<synchronous>, transform_indices = @transform_0, window_bounds = array<i64: 216, 76>}, {pipeline_mode = #tpu.pipeline_mode<synchronous>, transform_indices = @transform_1, window_bounds = array<i64: 76, 304>}, {pipeline_mode = #tpu.pipeline_mode<synchronous>, transform_indices = @transform_2, window_bounds = array<i64: 1, 304>}, {pipeline_mode = #tpu.pipeline_mode<synchronous>, transform_indices = @transform_3, window_bounds = array<i64: 216, 304>}]} {
    %c0 = arith.constant 0 : index
    %c0_0 = arith.constant 0 : index
    %0 = vector.load %arg1[%c0, %c0_0] : memref<216x76xf32, #tpu.memory_space<vmem>>, vector<216x76xf32>
    %c0_1 = arith.constant 0 : index
    %c0_2 = arith.constant 0 : index
    %1 = vector.load %arg2[%c0_1, %c0_2] : memref<76x304xf32, #tpu.memory_space<vmem>>, vector<76x304xf32>
    %cst = arith.constant dense<0.000000e+00> : vector<216x304xf32>
    %2 = tpu.matmul %0, %1, %cst {dimension_numbers = #tpu.dot_dimension_numbers<[1], [0], [0], [1], [0, 0, 1, 1], [], []>} : vector<216x76xf32>, vector<76x304xf32>, vector<216x304xf32> -> vector<216x304xf32>
    %c0_3 = arith.constant 0 : index
    %c0_4 = arith.constant 0 : index
    %3 = vector.load %arg3[%c0_3, %c0_4] : memref<1x304xf32, #tpu.memory_space<vmem>>, vector<1x304xf32>
    %4 = vector.broadcast %3 : vector<1x304xf32> to vector<216x304xf32>
    %5 = arith.addf %2, %4 : vector<216x304xf32>
    %cst_5 = arith.constant 0.000000e+00 : f32
    %6 = vector.broadcast %cst_5 : f32 to vector<216x304xf32>
    %7 = arith.cmpf ogt, %5, %6 : vector<216x304xf32>
    %cst_6 = arith.constant -3.550000e-01 : f32
    %8 = vector.broadcast %cst_6 : f32 to vector<216x304xf32>
    %9 = arith.mulf %5, %8 : vector<216x304xf32>
    %10 = arith.select %7, %5, %9 : vector<216x304xi1>, vector<216x304xf32>
    %11 = math.absf %10 : vector<216x304xf32>
    %c0_7 = arith.constant 0 : index
    %c0_8 = arith.constant 0 : index
    %12 = vector.load %arg4[%c0_7, %c0_8] : memref<216x304xf32, #tpu.memory_space<vmem>>, vector<216x304xf32>
    tpu.vector_store %arg4[%c0_7, %c0_8], %11 {strides = array<i32>} : memref<216x304xf32, #tpu.memory_space<vmem>>, vector<216x304xf32>,
    return
  }
  func.func @transform_0(%arg0: i32) -> (i32, i32) {
    %c0_i32 = arith.constant 0 : i32
    %c0_i32_0 = arith.constant 0 : i32
    %c0_i32_1 = arith.constant 0 : i32
    return %c0_i32, %c0_i32_0 : i32, i32
  }
  func.func @transform_1(%arg0: i32) -> (i32, i32) {
    %c0_i32 = arith.constant 0 : i32
    %c0_i32_0 = arith.constant 0 : i32
    %c0_i32_1 = arith.constant 0 : i32
    return %c0_i32, %c0_i32_0 : i32, i32
  }
  func.func @transform_2(%arg0: i32) -> (i32, i32) {
    %c0_i32 = arith.constant 0 : i32
    %c0_i32_0 = arith.constant 0 : i32
    %c0_i32_1 = arith.constant 0 : i32
    return %c0_i32, %c0_i32_0 : i32, i32
  }
  func.func @transform_3(%arg0: i32) -> (i32, i32) {
    %c0_i32 = arith.constant 0 : i32
    %c0_i32_0 = arith.constant 0 : i32
    %c0_i32_1 = arith.constant 0 : i32
    return %c0_i32, %c0_i32_0 : i32, i32
  }
}

</mosaic_0001>

<bundles_post_ra>
// kernel: conv_transpose_model.1
= control target key start
LH: loop header
LB: loop body
LE: loop exit
PB: predicated region body
PF: predicated region fallthrough
CT: control target
= control target key end

     0   :  { %vm161_vm0 = vcmask 1043456   ;;  %vm79_vm1 = vcmask 621568   ;;  %vm791_vm5 = vcmask 392192   ;;  %s1713_s1 = inlined_call_operand.vmem [shape: f32[76,304], index: 1, kind: input, shape index: {}]   ;;  %s1714_s0 = inlined_call_operand.vmem [shape: f32[216,76], index: 0, kind: input, shape index: {}]   ;;  %s1715_s2 = inlined_call_operand.vmem [shape: f32[1,304], index: 2, kind: input, shape index: {}]   ;;  %s1716_s3 = inlined_call_operand.vmem [shape: f32[216,304], index: 3, kind: output, shape index: {}]  }
   0x1   :  { %v1012_v0 = vld [vmem:[%s1713_s1 + $0xe8] sm:$0xf]  ;;  %v1017_v1 = vld [vmem:[%s1713_s1 + $0xd0] sm:$0xff]  ;;  %v68_v2 = vld [vmem:[%s1713_s1 + $0xd8] sm:$0xf] }
   0x2   :  { %931 = vmatpush.msk.msra.mxu2 %vm161_vm0, %v1012_v0  ;;  %875 = vmatpush.msk.msra.mxu0 %vm161_vm0, %v68_v2  ;;  %v1028_v3 = vld [vmem:[%s1713_s1 + $0xe0] sm:$0xf]  ;;  %v1038_v5 = vld [vmem:[%s1713_s1 + $0xb8] sm:$0xff]  ;;  %v1043_v6 = vld [vmem:[%s1713_s1 + $0xc8] sm:$0xff] }
   0x3   :  { %v65_v4 = vld [vmem:[%s1713_s1 + $0xc0] sm:$0xff]  ;;  %903 = vmatpush.msk.msra.mxu1 %vm161_vm0, %v1028_v3  ;;  %v62_v7 = vld [vmem:[%s1713_s1 + $0xa8] sm:$0xff]  ;;  %959 = vmatpush.msk.msra.mxu3 %vm161_vm0, %v68_v2  ;;  %v1053_v8 = vld [vmem:[%s1713_s1 + $0xb0] sm:$0xff] }
   0x4   :  { %374 = vmatpush.msra.mxu2 %v1017_v1  ;;  %178 = vmatpush.msra.mxu0 %v65_v4  ;;  %v1059_v9 = vld [vmem:[%s1713_s1 + $0xa0] sm:$0xff]  ;;  %v59_v10 = vld [vmem:[%s1713_s1 + $0x90] sm:$0xff]  ;;  %v1068_v11 = vld [vmem:[%s1713_s1 + $0x98] sm:$0xff] }
   0x5   :  { %276 = vmatpush.msra.mxu1 %v1043_v6  ;;  %960 = vmatpush.msra.mxu3 %v65_v4  ;;  %v1074_v12 = vld [vmem:[%s1713_s1 + $0x88] sm:$0xff]  ;;  %v56_v13 = vld [vmem:[%s1713_s1 + $0x78] sm:$0xff]  ;;  %v57_v14 = vld [vmem:[%s1713_s1 + $0x80] sm:$0xff] }
   0x6   :  { %375 = vmatpush.msra.mxu2 %v1038_v5  ;;  %179 = vmatpush.msra.mxu0 %v62_v7  ;;  %v1087_v15 = vld [vmem:[%s1713_s1 + $0x70] sm:$0xff]  ;;  %v53_v16 = vld [vmem:[%s1713_s1 + $0x60] sm:$0xff]  ;;  %v54_v17 = vld [vmem:[%s1713_s1 + $0x68] sm:$0xff] }
   0x7   :  { %277 = vmatpush.msra.mxu1 %v1053_v8  ;;  %961 = vmatpush.msra.mxu3 %v62_v7  ;;  %v1099_v18 = vld [vmem:[%s1713_s1 + $0x58] sm:$0xff]  ;;  %v50_v19 = vld [vmem:[%s1713_s1 + $0x48] sm:$0xff]  ;;  %v51_v20 = vld [vmem:[%s1713_s1 + $0x50] sm:$0xff] }
   0x8   :  { %376 = vmatpush.msra.mxu2 %v1059_v9  ;;  %180 = vmatpush.msra.mxu0 %v59_v10  ;;  %v1111_v21 = vld [vmem:[%s1713_s1 + $0x40] sm:$0xff]  ;;  %v47_v22 = vld [vmem:[%s1713_s1 + $0x30] sm:$0xff]  ;;  %v48_v23 = vld [vmem:[%s1713_s1 + $0x38] sm:$0xff] }
   0x9   :  { %278 = vmatpush.msra.mxu1 %v1068_v11  ;;  %962 = vmatpush.msra.mxu3 %v59_v10  ;;  %v1123_v24 = vld [vmem:[%s1713_s1 + $0x28] sm:$0xff]  ;;  %v44_v25 = vld [vmem:[%s1713_s1 + $0x18] sm:$0xff]  ;;  %v45_v26 = vld [vmem:[%s1713_s1 + $0x20] sm:$0xff] }
   0xa   :  { %377 = vmatpush.msra.mxu2 %v1074_v12  ;;  %181 = vmatpush.msra.mxu0 %v56_v13  ;;  %v1135_v27 = vld [vmem:[%s1713_s1 + $0x10] sm:$0xff]  ;;  %v41_v28 = vld [vmem:[%s1713_s1] sm:$0xff]  ;;  %v42_v30 = vld [vmem:[%s1713_s1 + $0x8] sm:$0xff] }
   0xb   :  { %279 = vmatpush.msra.mxu1 %v57_v14  ;;  %963 = vmatpush.msra.mxu3 %v56_v13  ;;  %v14_v29 = vld [vmem:[%s1714_s0] sm:$0xff]  ;;  %v1152_v31 = vld [vmem:[%s1714_s0 + $0xa8] sm:$0xff]  ;;  %v1168_v33 = vld [vmem:[%s1714_s0 + $0xb0] sm:$0xff] }
   0xc   :  { %378 = vmatpush.msra.mxu2 %v1087_v15  ;;  %182 = vmatpush.msra.mxu0 %v53_v16  ;;  %v15_v32 = vld [vmem:[%s1714_s0 + $0x8] sm:$0xff]  ;;  %v16_v34 = vld [vmem:[%s1714_s0 + $0x10] sm:$0xff]  ;;  %v1183_v35 = vld [vmem:[%s1714_s0 + $0xb8] sm:$0xff] }
   0xd   :  { %280 = vmatpush.msra.mxu1 %v54_v17  ;;  %964 = vmatpush.msra.mxu3 %v53_v16  ;;  %v17_v36 = vld [vmem:[%s1714_s0 + $0x18] sm:$0xff]  ;;  %v1198_v37 = vld [vmem:[%s1714_s0 + $0xc0] sm:$0xff]  ;;  %v1214_v39 = vld [vmem:[%s1714_s0 + $0xc8] sm:$0xff] }
   0xe   :  { %379 = vmatpush.msra.mxu2 %v1099_v18  ;;  %183 = vmatpush.msra.mxu0 %v50_v19  ;;  %v18_v38 = vld [vmem:[%s1714_s0 + $0x20] sm:$0xff]  ;;  %v19_v40 = vld [vmem:[%s1714_s0 + $0x28] sm:$0xff]  ;;  %v1231_v41 = vld [vmem:[%s1714_s0 + $0xd0] sm:$0xff] }
   0xf   :  { %281 = vmatpush.msra.mxu1 %v51_v20  ;;  %965 = vmatpush.msra.mxu3 %v50_v19  ;;  %v20_v42 = vld [vmem:[%s1714_s0 + $0x30] sm:$0xff]  ;;  %v21_v43 = vld [vmem:[%s1714_s0 + $0x38] sm:$0xff]  ;;  %v22_v44 = vld [vmem:[%s1714_s0 + $0x40] sm:$0xff] }
  0x10   :  { %380 = vmatpush.msra.mxu2 %v1111_v21  ;;  %184 = vmatpush.msra.mxu0 %v47_v22  ;;  %v23_v45 = vld [vmem:[%s1714_s0 + $0x48] sm:$0xff]  ;;  %v24_v46 = vld [vmem:[%s1714_s0 + $0x50] sm:$0xff]  ;;  %v25_v47 = vld [vmem:[%s1714_s0 + $0x58] sm:$0xff] }
  0x11   :  { %282 = vmatpush.msra.mxu1 %v48_v23  ;;  %966 = vmatpush.msra.mxu3 %v47_v22  ;;  %v26_v48 = vld [vmem:[%s1714_s0 + $0x60] sm:$0xff]  ;;  %v27_v49 = vld [vmem:[%s1714_s0 + $0x68] sm:$0xff]  ;;  %v28_v50 = vld [vmem:[%s1714_s0 + $0x70] sm:$0xff] }
  0x12   :  { %381 = vmatpush.msra.mxu2 %v1123_v24  ;;  %185 = vmatpush.msra.mxu0 %v44_v25  ;;  %v29_v51 = vld [vmem:[%s1714_s0 + $0x78] sm:$0xff]  ;;  %v71_v52 = vld [vmem:[%s1715_s2] sm:$0x7] }
  0x13   :  { %283 = vmatpush.msra.mxu1 %v45_v26  ;;  %967 = vmatpush.msra.mxu3 %v44_v25  ;;  %v1320_v53 = vperm.slane %v71_v52, 0  ;;  %v1322_v54 = vperm.slane %v71_v52, 1  ;;  %v30_v55 = vld [vmem:[%s1714_s0 + $0x80] sm:$0xff]  ;;  %v1332_v60 = vperm.slane %v71_v52, 2  ;;  %v32_v25 = vld [vmem:[%s1714_s0 + $0x90] sm:$0xff] }
  0x14   :  { %382 = vmatpush.msra.mxu2 %v1135_v27  ;;  %186 = vmatpush.msra.mxu0 %v41_v28 }
  0x15   :  { %932 = vmatmul.msk.f32.vlgmr.msra.gmra.mxu2 %vm79_vm1, %v14_v29  ;;  %284 = vmatpush.msra.mxu1 %v42_v30 }
  0x16   :  { %876 = vmatmul.msk.f32.vlgmr.msra.gmra.mxu0 %vm79_vm1, %v14_v29  ;;  %904 = vmatmul.msk.f32.vlgmr.msra.gmra.mxu1 %vm79_vm1, %v14_v29 }
  0x17   :  { %968 = vmatpush.msra.mxu3 %v41_v28 }
  0x18   :  { %897 = vmatmul.msk.f32.vlgmr.msra.gmra.mxu3 %vm79_vm1, %v1152_v31 }
  0x19   :  { %969 = vmatpush.msk.msrb.mxu3 %vm161_vm0, %v1028_v3 }
  0x1b   :  { %970 = vmatpush.msrb.mxu3 %v1043_v6 }
  0x1d   :  { %933 = vmatmul.msk.f32.gmra.mxu2 %vm79_vm1, %v15_v32  ;;  %971 = vmatpush.msrb.mxu3 %v1053_v8 }
  0x1e   :  { %877 = vmatmul.msk.f32.gmra.mxu0 %vm79_vm1, %v15_v32  ;;  %905 = vmatmul.msk.f32.gmra.mxu1 %vm79_vm1, %v15_v32 }
  0x1f   :  { %972 = vmatpush.msrb.mxu3 %v1068_v11 }
  0x20   :  { %898 = vmatmul.msk.f32.gmra.mxu3 %vm79_vm1, %v1168_v33 }
  0x21   :  { %973 = vmatpush.msrb.mxu3 %v57_v14 }
  0x23   :  { %974 = vmatpush.msrb.mxu3 %v54_v17 }
  0x25   :  { %934 = vmatmul.msk.f32.gmra.mxu2 %vm79_vm1, %v16_v34  ;;  %975 = vmatpush.msrb.mxu3 %v51_v20 }
  0x26   :  { %878 = vmatmul.msk.f32.gmra.mxu0 %vm79_vm1, %v16_v34  ;;  %906 = vmatmul.msk.f32.gmra.mxu1 %vm79_vm1, %v16_v34 }
  0x27   :  { %976 = vmatpush.msrb.mxu3 %v48_v23 }
  0x28   :  { %899 = vmatmul.msk.f32.gmra.mxu3 %vm79_vm1, %v1183_v35 }
  0x29   :  { %977 = vmatpush.msrb.mxu3 %v45_v26 }
  0x2b   :  { %978 = vmatpush.msrb.mxu3 %v42_v30 }
  0x2d   :  { %979 = vmatpush.msk.msra.mxu3 %vm161_vm0, %v1012_v0  ;;  %935 = vmatmul.msk.f32.gmra.mxu2 %vm79_vm1, %v17_v36 }
  0x2e   :  { %879 = vmatmul.msk.f32.gmra.mxu0 %vm79_vm1, %v17_v36  ;;  %907 = vmatmul.msk.f32.gmra.mxu1 %vm79_vm1, %v17_v36 }
  0x2f   :  { %980 = vmatpush.msra.mxu3 %v1017_v1 }
  0x30   :  { %900 = vmatmul.msk.f32.gmra.mxu3 %vm79_vm1, %v1198_v37 }
  0x31   :  { %981 = vmatpush.msra.mxu3 %v1038_v5  ;;  %v31_v5 = vld [vmem:[%s1714_s0 + $0x88] sm:$0xff] }
  0x33   :  { %982 = vmatpush.msra.mxu3 %v1059_v9 }
  0x35   :  { %936 = vmatmul.msk.f32.gmra.mxu2 %vm79_vm1, %v18_v38  ;;  %983 = vmatpush.msra.mxu3 %v1074_v12 }
  0x36   :  { %880 = vmatmul.msk.f32.gmra.mxu0 %vm79_vm1, %v18_v38  ;;  %908 = vmatmul.msk.f32.gmra.mxu1 %vm79_vm1, %v18_v38 }
  0x37   :  { %984 = vmatpush.msra.mxu3 %v1087_v15 }
  0x38   :  { %901 = vmatmul.msk.f32.gmra.mxu3 %vm79_vm1, %v1214_v39 }
  0x39   :  { %985 = vmatpush.msra.mxu3 %v1099_v18 }
  0x3b   :  { %986 = vmatpush.msra.mxu3 %v1111_v21 }
  0x3d   :  { %937 = vmatmul.msk.f32.gmra.mxu2 %vm79_vm1, %v19_v40  ;;  %987 = vmatpush.msra.mxu3 %v1123_v24 }
  0x3e   :  { %881 = vmatmul.msk.f32.gmra.mxu0 %vm79_vm1, %v19_v40  ;;  %909 = vmatmul.msk.f32.gmra.mxu1 %vm79_vm1, %v19_v40 }
  0x3f   :  { %988 = vmatpush.msra.mxu3 %v1135_v27 }
  0x40   :  { %902 = vmatmul.msk.f32.gmra.mxu3 %vm79_vm1, %v1231_v41 }
  0x45   :  { %938 = vmatmul.msk.f32.gmra.mxu2 %vm79_vm1, %v20_v42 }
  0x46   :  { %882 = vmatmul.msk.f32.gmra.mxu0 %vm79_vm1, %v20_v42  ;;  %910 = vmatmul.msk.f32.gmra.mxu1 %vm79_vm1, %v20_v42 }
  0x48   :  { %925 = vmatmul.msk.f32.vlgmr.msrb.gmra.mxu3 %vm79_vm1, %v1152_v31 }
  0x4d   :  { %939 = vmatmul.msk.f32.gmra.mxu2 %vm79_vm1, %v21_v43 }
  0x4e   :  { %883 = vmatmul.msk.f32.gmra.mxu0 %vm79_vm1, %v21_v43  ;;  %911 = vmatmul.msk.f32.gmra.mxu1 %vm79_vm1, %v21_v43 }
  0x50   :  { %926 = vmatmul.msk.f32.gmra.mxu3 %vm79_vm1, %v1168_v33 }
  0x55   :  { %940 = vmatmul.msk.f32.gmra.mxu2 %vm79_vm1, %v22_v44 }
  0x56   :  { %884 = vmatmul.msk.f32.gmra.mxu0 %vm79_vm1, %v22_v44  ;;  %912 = vmatmul.msk.f32.gmra.mxu1 %vm79_vm1, %v22_v44 }
  0x58   :  { %927 = vmatmul.msk.f32.gmra.mxu3 %vm79_vm1, %v1183_v35 }
  0x5d   :  { %941 = vmatmul.msk.f32.gmra.mxu2 %vm79_vm1, %v23_v45 }
  0x5e   :  { %885 = vmatmul.msk.f32.gmra.mxu0 %vm79_vm1, %v23_v45  ;;  %913 = vmatmul.msk.f32.gmra.mxu1 %vm79_vm1, %v23_v45 }
  0x60   :  { %928 = vmatmul.msk.f32.gmra.mxu3 %vm79_vm1, %v1198_v37 }
  0x65   :  { %942 = vmatmul.msk.f32.gmra.mxu2 %vm79_vm1, %v24_v46 }
  0x66   :  { %886 = vmatmul.msk.f32.gmra.mxu0 %vm79_vm1, %v24_v46  ;;  %914 = vmatmul.msk.f32.gmra.mxu1 %vm79_vm1, %v24_v46  ;;  %v33_v46 = vld [vmem:[%s1714_s0 + $0x98] sm:$0xff] }
  0x68   :  { %929 = vmatmul.msk.f32.gmra.mxu3 %vm79_vm1, %v1214_v39 }
  0x6d   :  { %943 = vmatmul.msk.f32.gmra.mxu2 %vm79_vm1, %v25_v47 }
  0x6e   :  { %887 = vmatmul.msk.f32.gmra.mxu0 %vm79_vm1, %v25_v47  ;;  %915 = vmatmul.msk.f32.gmra.mxu1 %vm79_vm1, %v25_v47 }
  0x70   :  { %930 = vmatmul.msk.f32.gmra.mxu3 %vm79_vm1, %v1231_v41 }
  0x75   :  { %944 = vmatmul.msk.f32.gmra.mxu2 %vm79_vm1, %v26_v48 }
  0x76   :  { %888 = vmatmul.msk.f32.gmra.mxu0 %vm79_vm1, %v26_v48  ;;  %916 = vmatmul.msk.f32.gmra.mxu1 %vm79_vm1, %v26_v48 }
  0x78   :  { %953 = vmatmul.msk.f32.vlgmr.msra.gmra.mxu3 %vm79_vm1, %v1152_v31 }
  0x7d   :  { %945 = vmatmul.msk.f32.gmra.mxu2 %vm79_vm1, %v27_v49 }
  0x7e   :  { %889 = vmatmul.msk.f32.gmra.mxu0 %vm79_vm1, %v27_v49  ;;  %917 = vmatmul.msk.f32.gmra.mxu1 %vm79_vm1, %v27_v49 }
  0x80   :  { %954 = vmatmul.msk.f32.gmra.mxu3 %vm79_vm1, %v1168_v33 }
  0x85   :  { %946 = vmatmul.msk.f32.gmra.mxu2 %vm79_vm1, %v28_v50 }
  0x86   :  { %890 = vmatmul.msk.f32.gmra.mxu0 %vm79_vm1, %v28_v50  ;;  %918 = vmatmul.msk.f32.gmra.mxu1 %vm79_vm1, %v28_v50 }
  0x88   :  { %955 = vmatmul.msk.f32.gmra.mxu3 %vm79_vm1, %v1183_v35 }
  0x8d   :  { %947 = vmatmul.msk.f32.gmra.mxu2 %vm79_vm1, %v29_v51 }
  0x8e   :  { %891 = vmatmul.msk.f32.gmra.mxu0 %vm79_vm1, %v29_v51  ;;  %919 = vmatmul.msk.f32.gmra.mxu1 %vm79_vm1, %v29_v51 }
  0x90   :  { %956 = vmatmul.msk.f32.gmra.mxu3 %vm79_vm1, %v1198_v37 }
  0x93   :  { %v188_v56 = vpop.f32.mrf.mxu0  ;;  %v286_v57 = vpop.f32.mrf.mxu1 }
  0x94   :  { %v189_v58 = vadd.f32 %v188_v56, %v1320_v53  ;;  %v287_v59 = vadd.f32 %v286_v57, %v1322_v54 }
  0x95   :  { %948 = vmatmul.msk.f32.gmra.mxu2 %vm79_vm1, %v30_v55 }
  0x96   :  { %vm465_vm2 = vcmp.gt.f32.partialorder %v189_v58, 0.0  ;;  %v546_v61 = vmul.f32 -0.355, %v189_v58  ;;  %vm466_vm3 = vcmp.gt.f32.partialorder %v287_v59, 0.0  ;;  %v547_v62 = vmul.f32 -0.355, %v287_v59  ;;  %892 = vmatmul.msk.f32.gmra.mxu0 %vm79_vm1, %v30_v55  ;;  %920 = vmatmul.msk.f32.gmra.mxu1 %vm79_vm1, %v30_v55 }
  0x98   :  { %v627_v63 = vsel %vm465_vm2, %v189_v58, %v546_v61  ;;  %v628_v0 = vsel %vm466_vm3, %v287_v59, %v547_v62  ;;  %v384_v1 = vpop.f32.mrf.mxu2  ;;  %957 = vmatmul.msk.f32.gmra.mxu3 %vm79_vm1, %v1214_v39 }
  0x99   :  { %v708_v2 = vand.u32 2147483647, %v627_v63  ;;  %v709_v3 = vand.u32 2147483647, %v628_v0  ;;  %v385_v4 = vadd.f32 %v384_v1, %v1332_v60 }
  0x9b   :  { %789 = vst [vmem:[%s1716_s3] sm:$0xff] %v708_v2  ;;  %vm467_vm4 = vcmp.gt.f32.partialorder %v385_v4, 0.0  ;;  %v548_v6 = vmul.f32 -0.355, %v385_v4  ;;  %v191_v7 = vpop.f32.mrf.mxu0  ;;  %v289_v8 = vpop.f32.mrf.mxu1 }
  0x9c   :  { %790 = vst [vmem:[%s1716_s3 + $0x8] sm:$0xff] %v709_v3  ;;  %v192_v9 = vadd.f32 %v191_v7, %v1320_v53  ;;  %v290_v10 = vadd.f32 %v289_v8, %v1322_v54  ;;  %v251_v11 = vpop.f32.mrf.mxu3 }
  0x9d   :  { %v629_v12 = vsel %vm467_vm4, %v385_v4, %v548_v6  ;;  %949 = vmatmul.msk.f32.gmra.mxu2 %vm79_vm1, %v31_v5  ;;  %v252_v13 = vadd.f32 %v251_v11, %v1320_v53  ;;  %v34_v6 = vld [vmem:[%s1714_s0 + $0xa0] sm:$0xff] }
  0x9e   :  { %v710_v14 = vand.u32 2147483647, %v629_v12  ;;  %vm468_vm6 = vcmp.gt.f32.partialorder %v192_v9, 0.0  ;;  %v549_v15 = vmul.f32 -0.355, %v192_v9  ;;  %vm469_vm7 = vcmp.gt.f32.partialorder %v290_v10, 0.0  ;;  %893 = vmatmul.msk.f32.gmra.mxu0 %vm79_vm1, %v31_v5  ;;  %921 = vmatmul.msk.f32.gmra.mxu1 %vm79_vm1, %v31_v5 }
  0x9f   :  { %v550_v16 = vmul.f32 -0.355, %v290_v10  ;;  %vm528_vm8 = vcmp.gt.f32.partialorder %v252_v13, 0.0  ;;  %v609_v17 = vmul.f32 -0.355, %v252_v13 }
  0xa0   :  { %792 = vst.msk [vmem:[%s1716_s3 + $0x10] sm:$0xff] %vm791_vm5, %v710_v14  ;;  %v630_v18 = vsel %vm468_vm6, %v192_v9, %v549_v15  ;;  %v387_v19 = vpop.f32.mrf.mxu2  ;;  %958 = vmatmul.msk.f32.gmra.mxu3 %vm79_vm1, %v1231_v41 }
  0xa1   :  { %v711_v20 = vand.u32 2147483647, %v630_v18  ;;  %v631_v21 = vsel %vm469_vm7, %v290_v10, %v550_v16  ;;  %v388_v22 = vadd.f32 %v387_v19, %v1332_v60  ;;  %v690_v23 = vsel %vm528_vm8, %v252_v13, %v609_v17 }
  0xa2   :  { %v712_v24 = vand.u32 2147483647, %v631_v21  ;;  %v771_v26 = vand.u32 2147483647, %v690_v23 }
  0xa3   :  { %793 = vst [vmem:[%s1716_s3 + $0x18] sm:$0xff] %v711_v20  ;;  %vm470_vm9 = vcmp.gt.f32.partialorder %v388_v22, 0.0  ;;  %v551_v27 = vmul.f32 -0.355, %v388_v22  ;;  %v194_v28 = vpop.f32.mrf.mxu0  ;;  %v292_v29 = vpop.f32.mrf.mxu1 }
  0xa4   :  { %794 = vst [vmem:[%s1716_s3 + $0x20] sm:$0xff] %v712_v24  ;;  %v195_v30 = vadd.f32 %v194_v28, %v1320_v53  ;;  %v293_v31 = vadd.f32 %v292_v29, %v1322_v54  ;;  %v254_v32 = vpop.f32.mrf.mxu3 }
  0xa5   :  { %v632_v33 = vsel %vm470_vm9, %v388_v22, %v551_v27  ;;  %950 = vmatmul.msk.f32.gmra.mxu2 %vm79_vm1, %v32_v25  ;;  %853 = vst [vmem:[%s1716_s3 + $0x1f8] sm:$0xff] %v771_v26  ;;  %v255_v34 = vadd.f32 %v254_v32, %v1320_v53 }
  0xa6   :  { %v713_v35 = vand.u32 2147483647, %v632_v33  ;;  %vm471_vm10 = vcmp.gt.f32.partialorder %v195_v30, 0.0  ;;  %v552_v36 = vmul.f32 -0.355, %v195_v30  ;;  %vm472_vm11 = vcmp.gt.f32.partialorder %v293_v31, 0.0  ;;  %894 = vmatmul.msk.f32.gmra.mxu0 %vm79_vm1, %v32_v25  ;;  %922 = vmatmul.msk.f32.gmra.mxu1 %vm79_vm1, %v32_v25 }
  0xa7   :  { %v553_v37 = vmul.f32 -0.355, %v293_v31  ;;  %vm531_vm12 = vcmp.gt.f32.partialorder %v255_v34, 0.0  ;;  %v612_v38 = vmul.f32 -0.355, %v255_v34 }
  0xa8   :  { %795 = vst.msk [vmem:[%s1716_s3 + $0x28] sm:$0xff] %vm791_vm5, %v713_v35  ;;  %v633_v39 = vsel %vm471_vm10, %v195_v30, %v552_v36  ;;  %v390_v40 = vpop.f32.mrf.mxu2 }
  0xa9   :  { %v714_v41 = vand.u32 2147483647, %v633_v39  ;;  %v634_v42 = vsel %vm472_vm11, %v293_v31, %v553_v37  ;;  %v391_v43 = vadd.f32 %v390_v40, %v1332_v60  ;;  %v693_v44 = vsel %vm531_vm12, %v255_v34, %v612_v38 }
  0xaa   :  { %v715_v45 = vand.u32 2147483647, %v634_v42  ;;  %v774_v47 = vand.u32 2147483647, %v693_v44 }
  0xab   :  { %796 = vst [vmem:[%s1716_s3 + $0x30] sm:$0xff] %v714_v41  ;;  %vm473_vm13 = vcmp.gt.f32.partialorder %v391_v43, 0.0  ;;  %v554_v48 = vmul.f32 -0.355, %v391_v43  ;;  %v197_v49 = vpop.f32.mrf.mxu0  ;;  %v295_v50 = vpop.f32.mrf.mxu1 }
  0xac   :  { %797 = vst [vmem:[%s1716_s3 + $0x38] sm:$0xff] %v715_v45  ;;  %v198_v51 = vadd.f32 %v197_v49, %v1320_v53  ;;  %v296_v52 = vadd.f32 %v295_v50, %v1322_v54  ;;  %v257_v55 = vpop.f32.mrf.mxu3 }
  0xad   :  { %v635_v56 = vsel %vm473_vm13, %v391_v43, %v554_v48  ;;  %951 = vmatmul.msk.f32.gmra.mxu2 %vm79_vm1, %v33_v46  ;;  %856 = vst [vmem:[%s1716_s3 + $0x210] sm:$0xff] %v774_v47  ;;  %v258_v57 = vadd.f32 %v257_v55, %v1320_v53 }
  0xae   :  { %v716_v58 = vand.u32 2147483647, %v635_v56  ;;  %vm474_vm14 = vcmp.gt.f32.partialorder %v198_v51, 0.0  ;;  %v555_v59 = vmul.f32 -0.355, %v198_v51  ;;  %vm475_vm15 = vcmp.gt.f32.partialorder %v296_v52, 0.0  ;;  %895 = vmatmul.msk.f32.gmra.mxu0 %vm79_vm1, %v33_v46  ;;  %923 = vmatmul.msk.f32.gmra.mxu1 %vm79_vm1, %v33_v46 }
  0xaf   :  { %v556_v61 = vmul.f32 -0.355, %v296_v52  ;;  %vm534_vm0 = vcmp.gt.f32.partialorder %v258_v57, 0.0  ;;  %v615_v62 = vmul.f32 -0.355, %v258_v57 }
  0xb0   :  { %798 = vst.msk [vmem:[%s1716_s3 + $0x40] sm:$0xff] %vm791_vm5, %v716_v58  ;;  %v636_v63 = vsel %vm474_vm14, %v198_v51, %v555_v59  ;;  %v393_v0 = vpop.f32.mrf.mxu2 }
  0xb1   :  { %v717_v1 = vand.u32 2147483647, %v636_v63  ;;  %v637_v2 = vsel %vm475_vm15, %v296_v52, %v556_v61  ;;  %v394_v3 = vadd.f32 %v393_v0, %v1332_v60  ;;  %v696_v4 = vsel %vm534_vm0, %v258_v57, %v615_v62 }
  0xb2   :  { %v718_v5 = vand.u32 2147483647, %v637_v2  ;;  %v777_v7 = vand.u32 2147483647, %v696_v4 }
  0xb3   :  { %799 = vst [vmem:[%s1716_s3 + $0x48] sm:$0xff] %v717_v1  ;;  %vm476_vm2 = vcmp.gt.f32.partialorder %v394_v3, 0.0  ;;  %v557_v8 = vmul.f32 -0.355, %v394_v3  ;;  %v200_v9 = vpop.f32.mrf.mxu0  ;;  %v298_v10 = vpop.f32.mrf.mxu1 }
  0xb4   :  { %800 = vst [vmem:[%s1716_s3 + $0x50] sm:$0xff] %v718_v5  ;;  %v201_v11 = vadd.f32 %v200_v9, %v1320_v53  ;;  %v299_v12 = vadd.f32 %v298_v10, %v1322_v54  ;;  %v260_v13 = vpop.f32.mrf.mxu3 }
  0xb5   :  { %v638_v14 = vsel %vm476_vm2, %v394_v3, %v557_v8  ;;  %952 = vmatmul.msk.f32.gmra.mxu2 %vm79_vm1, %v34_v6  ;;  %859 = vst [vmem:[%s1716_s3 + $0x228] sm:$0xff] %v777_v7  ;;  %v261_v15 = vadd.f32 %v260_v13, %v1320_v53 }
  0xb6   :  { %v719_v16 = vand.u32 2147483647, %v638_v14  ;;  %vm477_vm3 = vcmp.gt.f32.partialorder %v201_v11, 0.0  ;;  %v558_v17 = vmul.f32 -0.355, %v201_v11  ;;  %vm478_vm4 = vcmp.gt.f32.partialorder %v299_v12, 0.0  ;;  %896 = vmatmul.msk.f32.gmra.mxu0 %vm79_vm1, %v34_v6  ;;  %924 = vmatmul.msk.f32.gmra.mxu1 %vm79_vm1, %v34_v6 }
  0xb7   :  { %v559_v18 = vmul.f32 -0.355, %v299_v12  ;;  %vm537_vm6 = vcmp.gt.f32.partialorder %v261_v15, 0.0  ;;  %v618_v19 = vmul.f32 -0.355, %v261_v15 }
  0xb8   :  { %801 = vst.msk [vmem:[%s1716_s3 + $0x58] sm:$0xff] %vm791_vm5, %v719_v16  ;;  %v639_v20 = vsel %vm477_vm3, %v201_v11, %v558_v17  ;;  %v396_v21 = vpop.f32.mrf.mxu2 }
  0xb9   :  { %v720_v22 = vand.u32 2147483647, %v639_v20  ;;  %v640_v23 = vsel %vm478_vm4, %v299_v12, %v559_v18  ;;  %v397_v24 = vadd.f32 %v396_v21, %v1332_v60  ;;  %v699_v25 = vsel %vm537_vm6, %v261_v15, %v618_v19 }
  0xba   :  { %v721_v26 = vand.u32 2147483647, %v640_v23  ;;  %v780_v27 = vand.u32 2147483647, %v699_v25 }
  0xbb   :  { %802 = vst [vmem:[%s1716_s3 + $0x60] sm:$0xff] %v720_v22  ;;  %vm479_vm1 = vcmp.gt.f32.partialorder %v397_v24, 0.0  ;;  %v560_v28 = vmul.f32 -0.355, %v397_v24  ;;  %v203_v29 = vpop.f32.mrf.mxu0  ;;  %v301_v30 = vpop.f32.mrf.mxu1 }
  0xbc   :  { %803 = vst [vmem:[%s1716_s3 + $0x68] sm:$0xff] %v721_v26  ;;  %v204_v31 = vadd.f32 %v203_v29, %v1320_v53  ;;  %v302_v32 = vadd.f32 %v301_v30, %v1322_v54  ;;  %v263_v33 = vpop.f32.mrf.mxu3 }
  0xbd   :  { %v641_v34 = vsel %vm479_vm1, %v397_v24, %v560_v28  ;;  %862 = vst [vmem:[%s1716_s3 + $0x240] sm:$0xff] %v780_v27  ;;  %v264_v35 = vadd.f32 %v263_v33, %v1320_v53 }
  0xbe   :  { %v722_v36 = vand.u32 2147483647, %v641_v34  ;;  %vm480_vm7 = vcmp.gt.f32.partialorder %v204_v31, 0.0  ;;  %v561_v37 = vmul.f32 -0.355, %v204_v31  ;;  %vm481_vm8 = vcmp.gt.f32.partialorder %v302_v32, 0.0 }
  0xbf   :  { %v562_v38 = vmul.f32 -0.355, %v302_v32  ;;  %vm540_vm9 = vcmp.gt.f32.partialorder %v264_v35, 0.0  ;;  %v621_v39 = vmul.f32 -0.355, %v264_v35 }
  0xc0   :  { %804 = vst.msk [vmem:[%s1716_s3 + $0x70] sm:$0xff] %vm791_vm5, %v722_v36  ;;  %v642_v40 = vsel %vm480_vm7, %v204_v31, %v561_v37  ;;  %v399_v41 = vpop.f32.mrf.mxu2 }
  0xc1   :  { %v723_v42 = vand.u32 2147483647, %v642_v40  ;;  %v643_v43 = vsel %vm481_vm8, %v302_v32, %v562_v38  ;;  %v400_v44 = vadd.f32 %v399_v41, %v1332_v60  ;;  %v702_v45 = vsel %vm540_vm9, %v264_v35, %v621_v39 }
  0xc2   :  { %v724_v46 = vand.u32 2147483647, %v643_v43  ;;  %v783_v47 = vand.u32 2147483647, %v702_v45 }
  0xc3   :  { %805 = vst [vmem:[%s1716_s3 + $0x78] sm:$0xff] %v723_v42  ;;  %vm482_vm10 = vcmp.gt.f32.partialorder %v400_v44, 0.0  ;;  %v563_v48 = vmul.f32 -0.355, %v400_v44  ;;  %v206_v49 = vpop.f32.mrf.mxu0  ;;  %v304_v50 = vpop.f32.mrf.mxu1 }
  0xc4   :  { %806 = vst [vmem:[%s1716_s3 + $0x80] sm:$0xff] %v724_v46  ;;  %v207_v51 = vadd.f32 %v206_v49, %v1320_v53  ;;  %v305_v52 = vadd.f32 %v304_v50, %v1322_v54  ;;  %v266_v55 = vpop.f32.mrf.mxu3 }
  0xc5   :  { %v644_v56 = vsel %vm482_vm10, %v400_v44, %v563_v48  ;;  %865 = vst [vmem:[%s1716_s3 + $0x258] sm:$0xff] %v783_v47  ;;  %v267_v57 = vadd.f32 %v266_v55, %v1320_v53 }
  0xc6   :  { %v725_v58 = vand.u32 2147483647, %v644_v56  ;;  %vm483_vm11 = vcmp.gt.f32.partialorder %v207_v51, 0.0  ;;  %v564_v59 = vmul.f32 -0.355, %v207_v51  ;;  %vm484_vm12 = vcmp.gt.f32.partialorder %v305_v52, 0.0 }
  0xc7   :  { %v565_v61 = vmul.f32 -0.355, %v305_v52  ;;  %vm543_vm13 = vcmp.gt.f32.partialorder %v267_v57, 0.0  ;;  %v624_v62 = vmul.f32 -0.355, %v267_v57 }
  0xc8   :  { %807 = vst.msk [vmem:[%s1716_s3 + $0x88] sm:$0xff] %vm791_vm5, %v725_v58  ;;  %v645_v63 = vsel %vm483_vm11, %v207_v51, %v564_v59  ;;  %v402_v0 = vpop.f32.mrf.mxu2 }
  0xc9   :  { %v726_v1 = vand.u32 2147483647, %v645_v63  ;;  %v646_v2 = vsel %vm484_vm12, %v305_v52, %v565_v61  ;;  %v403_v3 = vadd.f32 %v402_v0, %v1332_v60  ;;  %v705_v4 = vsel %vm543_vm13, %v267_v57, %v624_v62 }
  0xca   :  { %v727_v5 = vand.u32 2147483647, %v646_v2  ;;  %v786_v6 = vand.u32 2147483647, %v705_v4 }
  0xcb   :  { %808 = vst [vmem:[%s1716_s3 + $0x90] sm:$0xff] %v726_v1  ;;  %vm485_vm14 = vcmp.gt.f32.partialorder %v403_v3, 0.0  ;;  %v566_v7 = vmul.f32 -0.355, %v403_v3  ;;  %v209_v8 = vpop.f32.mrf.mxu0  ;;  %v307_v9 = vpop.f32.mrf.mxu1 }
  0xcc   :  { %809 = vst [vmem:[%s1716_s3 + $0x98] sm:$0xff] %v727_v5  ;;  %v210_v10 = vadd.f32 %v209_v8, %v1320_v53  ;;  %v308_v11 = vadd.f32 %v307_v9, %v1322_v54  ;;  %v349_v12 = vpop.f32.mrf.mxu3 }
  0xcd   :  { %v647_v13 = vsel %vm485_vm14, %v403_v3, %v566_v7  ;;  %868 = vst [vmem:[%s1716_s3 + $0x270] sm:$0xff] %v786_v6  ;;  %v350_v14 = vadd.f32 %v349_v12, %v1322_v54 }
  0xce   :  { %v728_v15 = vand.u32 2147483647, %v647_v13  ;;  %vm486_vm15 = vcmp.gt.f32.partialorder %v210_v10, 0.0  ;;  %v567_v16 = vmul.f32 -0.355, %v210_v10  ;;  %vm487_vm0 = vcmp.gt.f32.partialorder %v308_v11, 0.0 }
  0xcf   :  { %v568_v17 = vmul.f32 -0.355, %v308_v11  ;;  %vm529_vm2 = vcmp.gt.f32.partialorder %v350_v14, 0.0  ;;  %v610_v18 = vmul.f32 -0.355, %v350_v14 }
  0xd0   :  { %810 = vst.msk [vmem:[%s1716_s3 + $0xa0] sm:$0xff] %vm791_vm5, %v728_v15  ;;  %v648_v19 = vsel %vm486_vm15, %v210_v10, %v567_v16  ;;  %v405_v20 = vpop.f32.mrf.mxu2 }
  0xd1   :  { %v729_v21 = vand.u32 2147483647, %v648_v19  ;;  %v649_v22 = vsel %vm487_vm0, %v308_v11, %v568_v17  ;;  %v406_v23 = vadd.f32 %v405_v20, %v1332_v60  ;;  %v691_v24 = vsel %vm529_vm2, %v350_v14, %v610_v18 }
  0xd2   :  { %v730_v25 = vand.u32 2147483647, %v649_v22  ;;  %v772_v26 = vand.u32 2147483647, %v691_v24 }
  0xd3   :  { %811 = vst [vmem:[%s1716_s3 + $0xa8] sm:$0xff] %v729_v21  ;;  %vm488_vm3 = vcmp.gt.f32.partialorder %v406_v23, 0.0  ;;  %v569_v27 = vmul.f32 -0.355, %v406_v23  ;;  %v212_v28 = vpop.f32.mrf.mxu0  ;;  %v310_v29 = vpop.f32.mrf.mxu1 }
  0xd4   :  { %812 = vst [vmem:[%s1716_s3 + $0xb0] sm:$0xff] %v730_v25  ;;  %v213_v30 = vadd.f32 %v212_v28, %v1320_v53  ;;  %v311_v31 = vadd.f32 %v310_v29, %v1322_v54  ;;  %v352_v32 = vpop.f32.mrf.mxu3 }
  0xd5   :  { %v650_v33 = vsel %vm488_vm3, %v406_v23, %v569_v27  ;;  %854 = vst [vmem:[%s1716_s3 + $0x200] sm:$0xff] %v772_v26  ;;  %v353_v34 = vadd.f32 %v352_v32, %v1322_v54 }
  0xd6   :  { %v731_v35 = vand.u32 2147483647, %v650_v33  ;;  %vm489_vm4 = vcmp.gt.f32.partialorder %v213_v30, 0.0  ;;  %v570_v36 = vmul.f32 -0.355, %v213_v30  ;;  %vm490_vm6 = vcmp.gt.f32.partialorder %v311_v31, 0.0 }
  0xd7   :  { %v571_v37 = vmul.f32 -0.355, %v311_v31  ;;  %vm532_vm1 = vcmp.gt.f32.partialorder %v353_v34, 0.0  ;;  %v613_v38 = vmul.f32 -0.355, %v353_v34 }
  0xd8   :  { %813 = vst.msk [vmem:[%s1716_s3 + $0xb8] sm:$0xff] %vm791_vm5, %v731_v35  ;;  %v651_v39 = vsel %vm489_vm4, %v213_v30, %v570_v36  ;;  %v408_v40 = vpop.f32.mrf.mxu2 }
  0xd9   :  { %v732_v41 = vand.u32 2147483647, %v651_v39  ;;  %v652_v42 = vsel %vm490_vm6, %v311_v31, %v571_v37  ;;  %v409_v43 = vadd.f32 %v408_v40, %v1332_v60  ;;  %v694_v44 = vsel %vm532_vm1, %v353_v34, %v613_v38 }
  0xda   :  { %v733_v45 = vand.u32 2147483647, %v652_v42  ;;  %v775_v46 = vand.u32 2147483647, %v694_v44 }
  0xdb   :  { %814 = vst [vmem:[%s1716_s3 + $0xc0] sm:$0xff] %v732_v41  ;;  %vm491_vm7 = vcmp.gt.f32.partialorder %v409_v43, 0.0  ;;  %v572_v47 = vmul.f32 -0.355, %v409_v43  ;;  %v215_v48 = vpop.f32.mrf.mxu0  ;;  %v313_v49 = vpop.f32.mrf.mxu1 }
  0xdc   :  { %815 = vst [vmem:[%s1716_s3 + $0xc8] sm:$0xff] %v733_v45  ;;  %v216_v50 = vadd.f32 %v215_v48, %v1320_v53  ;;  %v314_v51 = vadd.f32 %v313_v49, %v1322_v54  ;;  %v355_v52 = vpop.f32.mrf.mxu3 }
  0xdd   :  { %v653_v55 = vsel %vm491_vm7, %v409_v43, %v572_v47  ;;  %857 = vst [vmem:[%s1716_s3 + $0x218] sm:$0xff] %v775_v46  ;;  %v356_v56 = vadd.f32 %v355_v52, %v1322_v54 }
  0xde   :  { %v734_v57 = vand.u32 2147483647, %v653_v55  ;;  %vm492_vm8 = vcmp.gt.f32.partialorder %v216_v50, 0.0  ;;  %v573_v58 = vmul.f32 -0.355, %v216_v50  ;;  %vm493_vm9 = vcmp.gt.f32.partialorder %v314_v51, 0.0 }
  0xdf   :  { %v574_v59 = vmul.f32 -0.355, %v314_v51  ;;  %vm535_vm10 = vcmp.gt.f32.partialorder %v356_v56, 0.0  ;;  %v616_v61 = vmul.f32 -0.355, %v356_v56 }
  0xe0   :  { %816 = vst.msk [vmem:[%s1716_s3 + $0xd0] sm:$0xff] %vm791_vm5, %v734_v57  ;;  %v654_v62 = vsel %vm492_vm8, %v216_v50, %v573_v58  ;;  %v411_v63 = vpop.f32.mrf.mxu2 }
  0xe1   :  { %v735_v0 = vand.u32 2147483647, %v654_v62  ;;  %v655_v1 = vsel %vm493_vm9, %v314_v51, %v574_v59  ;;  %v412_v2 = vadd.f32 %v411_v63, %v1332_v60  ;;  %v697_v3 = vsel %vm535_vm10, %v356_v56, %v616_v61 }
  0xe2   :  { %v736_v4 = vand.u32 2147483647, %v655_v1  ;;  %v778_v5 = vand.u32 2147483647, %v697_v3 }
  0xe3   :  { %817 = vst [vmem:[%s1716_s3 + $0xd8] sm:$0xff] %v735_v0  ;;  %vm494_vm11 = vcmp.gt.f32.partialorder %v412_v2, 0.0  ;;  %v575_v6 = vmul.f32 -0.355, %v412_v2  ;;  %v218_v7 = vpop.f32.mrf.mxu0  ;;  %v316_v8 = vpop.f32.mrf.mxu1 }
  0xe4   :  { %818 = vst [vmem:[%s1716_s3 + $0xe0] sm:$0xff] %v736_v4  ;;  %v219_v9 = vadd.f32 %v218_v7, %v1320_v53  ;;  %v317_v10 = vadd.f32 %v316_v8, %v1322_v54  ;;  %v358_v11 = vpop.f32.mrf.mxu3 }
  0xe5   :  { %v656_v12 = vsel %vm494_vm11, %v412_v2, %v575_v6  ;;  %860 = vst [vmem:[%s1716_s3 + $0x230] sm:$0xff] %v778_v5  ;;  %v359_v13 = vadd.f32 %v358_v11, %v1322_v54 }
  0xe6   :  { %v737_v14 = vand.u32 2147483647, %v656_v12  ;;  %vm495_vm12 = vcmp.gt.f32.partialorder %v219_v9, 0.0  ;;  %v576_v15 = vmul.f32 -0.355, %v219_v9  ;;  %vm496_vm13 = vcmp.gt.f32.partialorder %v317_v10, 0.0 }
  0xe7   :  { %v577_v16 = vmul.f32 -0.355, %v317_v10  ;;  %vm538_vm14 = vcmp.gt.f32.partialorder %v359_v13, 0.0  ;;  %v619_v17 = vmul.f32 -0.355, %v359_v13 }
  0xe8   :  { %819 = vst.msk [vmem:[%s1716_s3 + $0xe8] sm:$0xff] %vm791_vm5, %v737_v14  ;;  %v657_v18 = vsel %vm495_vm12, %v219_v9, %v576_v15  ;;  %v414_v19 = vpop.f32.mrf.mxu2 }
  0xe9   :  { %v738_v20 = vand.u32 2147483647, %v657_v18  ;;  %v658_v21 = vsel %vm496_vm13, %v317_v10, %v577_v16  ;;  %v415_v22 = vadd.f32 %v414_v19, %v1332_v60  ;;  %v700_v23 = vsel %vm538_vm14, %v359_v13, %v619_v17 }
  0xea   :  { %v739_v24 = vand.u32 2147483647, %v658_v21  ;;  %v781_v25 = vand.u32 2147483647, %v700_v23 }
  0xeb   :  { %820 = vst [vmem:[%s1716_s3 + $0xf0] sm:$0xff] %v738_v20  ;;  %vm497_vm15 = vcmp.gt.f32.partialorder %v415_v22, 0.0  ;;  %v578_v26 = vmul.f32 -0.355, %v415_v22  ;;  %v221_v27 = vpop.f32.mrf.mxu0  ;;  %v319_v28 = vpop.f32.mrf.mxu1 }
  0xec   :  { %821 = vst [vmem:[%s1716_s3 + $0xf8] sm:$0xff] %v739_v24  ;;  %v222_v29 = vadd.f32 %v221_v27, %v1320_v53  ;;  %v320_v30 = vadd.f32 %v319_v28, %v1322_v54  ;;  %v361_v31 = vpop.f32.mrf.mxu3 }
  0xed   :  { %v659_v32 = vsel %vm497_vm15, %v415_v22, %v578_v26  ;;  %863 = vst [vmem:[%s1716_s3 + $0x248] sm:$0xff] %v781_v25  ;;  %v362_v33 = vadd.f32 %v361_v31, %v1322_v54 }
  0xee   :  { %v740_v34 = vand.u32 2147483647, %v659_v32  ;;  %vm498_vm0 = vcmp.gt.f32.partialorder %v222_v29, 0.0  ;;  %v579_v35 = vmul.f32 -0.355, %v222_v29  ;;  %vm499_vm2 = vcmp.gt.f32.partialorder %v320_v30, 0.0 }
  0xef   :  { %v580_v36 = vmul.f32 -0.355, %v320_v30  ;;  %vm541_vm3 = vcmp.gt.f32.partialorder %v362_v33, 0.0  ;;  %v622_v37 = vmul.f32 -0.355, %v362_v33 }
  0xf0   :  { %822 = vst.msk [vmem:[%s1716_s3 + $0x100] sm:$0xff] %vm791_vm5, %v740_v34  ;;  %v660_v38 = vsel %vm498_vm0, %v222_v29, %v579_v35  ;;  %v417_v39 = vpop.f32.mrf.mxu2 }
  0xf1   :  { %v741_v40 = vand.u32 2147483647, %v660_v38  ;;  %v661_v41 = vsel %vm499_vm2, %v320_v30, %v580_v36  ;;  %v418_v42 = vadd.f32 %v417_v39, %v1332_v60  ;;  %v703_v43 = vsel %vm541_vm3, %v362_v33, %v622_v37 }
  0xf2   :  { %v742_v44 = vand.u32 2147483647, %v661_v41  ;;  %v784_v45 = vand.u32 2147483647, %v703_v43 }
  0xf3   :  { %823 = vst [vmem:[%s1716_s3 + $0x108] sm:$0xff] %v741_v40  ;;  %vm500_vm4 = vcmp.gt.f32.partialorder %v418_v42, 0.0  ;;  %v581_v46 = vmul.f32 -0.355, %v418_v42  ;;  %v224_v47 = vpop.f32.mrf.mxu0  ;;  %v322_v48 = vpop.f32.mrf.mxu1 }
  0xf4   :  { %824 = vst [vmem:[%s1716_s3 + $0x110] sm:$0xff] %v742_v44  ;;  %v225_v49 = vadd.f32 %v224_v47, %v1320_v53  ;;  %v323_v50 = vadd.f32 %v322_v48, %v1322_v54  ;;  %v364_v51 = vpop.f32.mrf.mxu3 }
  0xf5   :  { %v662_v52 = vsel %vm500_vm4, %v418_v42, %v581_v46  ;;  %866 = vst [vmem:[%s1716_s3 + $0x260] sm:$0xff] %v784_v45  ;;  %v365_v55 = vadd.f32 %v364_v51, %v1322_v54 }
  0xf6   :  { %v743_v56 = vand.u32 2147483647, %v662_v52  ;;  %vm501_vm6 = vcmp.gt.f32.partialorder %v225_v49, 0.0  ;;  %v582_v57 = vmul.f32 -0.355, %v225_v49  ;;  %vm502_vm1 = vcmp.gt.f32.partialorder %v323_v50, 0.0 }
  0xf7   :  { %v583_v58 = vmul.f32 -0.355, %v323_v50  ;;  %vm544_vm7 = vcmp.gt.f32.partialorder %v365_v55, 0.0  ;;  %v625_v59 = vmul.f32 -0.355, %v365_v55 }
  0xf8   :  { %825 = vst.msk [vmem:[%s1716_s3 + $0x118] sm:$0xff] %vm791_vm5, %v743_v56  ;;  %v663_v61 = vsel %vm501_vm6, %v225_v49, %v582_v57  ;;  %v420_v62 = vpop.f32.mrf.mxu2 }
  0xf9   :  { %v744_v63 = vand.u32 2147483647, %v663_v61  ;;  %v664_v0 = vsel %vm502_vm1, %v323_v50, %v583_v58  ;;  %v421_v1 = vadd.f32 %v420_v62, %v1332_v60  ;;  %v706_v2 = vsel %vm544_vm7, %v365_v55, %v625_v59 }
  0xfa   :  { %v745_v3 = vand.u32 2147483647, %v664_v0  ;;  %v787_v4 = vand.u32 2147483647, %v706_v2 }
  0xfb   :  { %826 = vst [vmem:[%s1716_s3 + $0x120] sm:$0xff] %v744_v63  ;;  %vm503_vm8 = vcmp.gt.f32.partialorder %v421_v1, 0.0  ;;  %v584_v5 = vmul.f32 -0.355, %v421_v1  ;;  %v227_v6 = vpop.f32.mrf.mxu0  ;;  %v325_v7 = vpop.f32.mrf.mxu1 }
  0xfc   :  { %827 = vst [vmem:[%s1716_s3 + $0x128] sm:$0xff] %v745_v3  ;;  %v228_v8 = vadd.f32 %v227_v6, %v1320_v53  ;;  %v326_v9 = vadd.f32 %v325_v7, %v1322_v54  ;;  %v447_v10 = vpop.f32.mrf.mxu3 }
  0xfd   :  { %v665_v11 = vsel %vm503_vm8, %v421_v1, %v584_v5  ;;  %869 = vst [vmem:[%s1716_s3 + $0x278] sm:$0xff] %v787_v4  ;;  %v448_v12 = vadd.f32 %v447_v10, %v1332_v60 }
  0xfe   :  { %v746_v13 = vand.u32 2147483647, %v665_v11  ;;  %vm504_vm9 = vcmp.gt.f32.partialorder %v228_v8, 0.0  ;;  %v585_v14 = vmul.f32 -0.355, %v228_v8  ;;  %vm505_vm10 = vcmp.gt.f32.partialorder %v326_v9, 0.0 }
  0xff   :  { %v586_v15 = vmul.f32 -0.355, %v326_v9  ;;  %vm530_vm11 = vcmp.gt.f32.partialorder %v448_v12, 0.0  ;;  %v611_v16 = vmul.f32 -0.355, %v448_v12 }
 0x100   :  { %828 = vst.msk [vmem:[%s1716_s3 + $0x130] sm:$0xff] %vm791_vm5, %v746_v13  ;;  %v666_v17 = vsel %vm504_vm9, %v228_v8, %v585_v14  ;;  %v423_v18 = vpop.f32.mrf.mxu2 }
 0x101   :  { %v747_v19 = vand.u32 2147483647, %v666_v17  ;;  %v667_v20 = vsel %vm505_vm10, %v326_v9, %v586_v15  ;;  %v424_v21 = vadd.f32 %v423_v18, %v1332_v60  ;;  %v692_v22 = vsel %vm530_vm11, %v448_v12, %v611_v16 }
 0x102   :  { %v748_v23 = vand.u32 2147483647, %v667_v20  ;;  %v773_v24 = vand.u32 2147483647, %v692_v22 }
 0x103   :  { %829 = vst [vmem:[%s1716_s3 + $0x138] sm:$0xff] %v747_v19  ;;  %vm506_vm12 = vcmp.gt.f32.partialorder %v424_v21, 0.0  ;;  %v587_v25 = vmul.f32 -0.355, %v424_v21  ;;  %v230_v26 = vpop.f32.mrf.mxu0  ;;  %v328_v27 = vpop.f32.mrf.mxu1 }
 0x104   :  { %830 = vst [vmem:[%s1716_s3 + $0x140] sm:$0xff] %v748_v23  ;;  %v231_v28 = vadd.f32 %v230_v26, %v1320_v53  ;;  %v329_v29 = vadd.f32 %v328_v27, %v1322_v54  ;;  %v450_v30 = vpop.f32.mrf.mxu3 }
 0x105   :  { %v668_v31 = vsel %vm506_vm12, %v424_v21, %v587_v25  ;;  %855 = vst.msk [vmem:[%s1716_s3 + $0x208] sm:$0xff] %vm791_vm5, %v773_v24  ;;  %v451_v32 = vadd.f32 %v450_v30, %v1332_v60 }
 0x106   :  { %v749_v33 = vand.u32 2147483647, %v668_v31  ;;  %vm507_vm13 = vcmp.gt.f32.partialorder %v231_v28, 0.0  ;;  %v588_v34 = vmul.f32 -0.355, %v231_v28  ;;  %vm508_vm14 = vcmp.gt.f32.partialorder %v329_v29, 0.0 }
 0x107   :  { %v589_v35 = vmul.f32 -0.355, %v329_v29  ;;  %vm533_vm15 = vcmp.gt.f32.partialorder %v451_v32, 0.0  ;;  %v614_v36 = vmul.f32 -0.355, %v451_v32 }
 0x108   :  { %831 = vst.msk [vmem:[%s1716_s3 + $0x148] sm:$0xff] %vm791_vm5, %v749_v33  ;;  %v669_v37 = vsel %vm507_vm13, %v231_v28, %v588_v34  ;;  %v426_v38 = vpop.f32.mrf.mxu2 }
 0x109   :  { %v750_v39 = vand.u32 2147483647, %v669_v37  ;;  %v670_v40 = vsel %vm508_vm14, %v329_v29, %v589_v35  ;;  %v427_v41 = vadd.f32 %v426_v38, %v1332_v60  ;;  %v695_v42 = vsel %vm533_vm15, %v451_v32, %v614_v36 }
 0x10a   :  { %v751_v43 = vand.u32 2147483647, %v670_v40  ;;  %v776_v44 = vand.u32 2147483647, %v695_v42 }
 0x10b   :  { %832 = vst [vmem:[%s1716_s3 + $0x150] sm:$0xff] %v750_v39  ;;  %vm509_vm0 = vcmp.gt.f32.partialorder %v427_v41, 0.0  ;;  %v590_v45 = vmul.f32 -0.355, %v427_v41  ;;  %v233_v46 = vpop.f32.mrf.mxu0  ;;  %v331_v47 = vpop.f32.mrf.mxu1 }
 0x10c   :  { %833 = vst [vmem:[%s1716_s3 + $0x158] sm:$0xff] %v751_v43  ;;  %v234_v48 = vadd.f32 %v233_v46, %v1320_v53  ;;  %v332_v49 = vadd.f32 %v331_v47, %v1322_v54  ;;  %v453_v50 = vpop.f32.mrf.mxu3 }
 0x10d   :  { %v671_v51 = vsel %vm509_vm0, %v427_v41, %v590_v45  ;;  %858 = vst.msk [vmem:[%s1716_s3 + $0x220] sm:$0xff] %vm791_vm5, %v776_v44  ;;  %v454_v52 = vadd.f32 %v453_v50, %v1332_v60 }
 0x10e   :  { %v752_v55 = vand.u32 2147483647, %v671_v51  ;;  %vm510_vm2 = vcmp.gt.f32.partialorder %v234_v48, 0.0  ;;  %v591_v56 = vmul.f32 -0.355, %v234_v48  ;;  %vm511_vm3 = vcmp.gt.f32.partialorder %v332_v49, 0.0 }
 0x10f   :  { %v592_v57 = vmul.f32 -0.355, %v332_v49  ;;  %vm536_vm4 = vcmp.gt.f32.partialorder %v454_v52, 0.0  ;;  %v617_v58 = vmul.f32 -0.355, %v454_v52 }
 0x110   :  { %834 = vst.msk [vmem:[%s1716_s3 + $0x160] sm:$0xff] %vm791_vm5, %v752_v55  ;;  %v672_v59 = vsel %vm510_vm2, %v234_v48, %v591_v56  ;;  %v429_v61 = vpop.f32.mrf.mxu2 }
 0x111   :  { %v753_v62 = vand.u32 2147483647, %v672_v59  ;;  %v673_v63 = vsel %vm511_vm3, %v332_v49, %v592_v57  ;;  %v430_v0 = vadd.f32 %v429_v61, %v1332_v60  ;;  %v698_v1 = vsel %vm536_vm4, %v454_v52, %v617_v58 }
 0x112   :  { %v754_v2 = vand.u32 2147483647, %v673_v63  ;;  %v779_v3 = vand.u32 2147483647, %v698_v1 }
 0x113   :  { %835 = vst [vmem:[%s1716_s3 + $0x168] sm:$0xff] %v753_v62  ;;  %vm512_vm6 = vcmp.gt.f32.partialorder %v430_v0, 0.0  ;;  %v593_v4 = vmul.f32 -0.355, %v430_v0  ;;  %v236_v5 = vpop.f32.mrf.mxu0  ;;  %v334_v6 = vpop.f32.mrf.mxu1 }
 0x114   :  { %836 = vst [vmem:[%s1716_s3 + $0x170] sm:$0xff] %v754_v2  ;;  %v237_v7 = vadd.f32 %v236_v5, %v1320_v53  ;;  %v335_v8 = vadd.f32 %v334_v6, %v1322_v54  ;;  %v456_v9 = vpop.f32.mrf.mxu3 }
 0x115   :  { %v674_v10 = vsel %vm512_vm6, %v430_v0, %v593_v4  ;;  %861 = vst.msk [vmem:[%s1716_s3 + $0x238] sm:$0xff] %vm791_vm5, %v779_v3  ;;  %v457_v11 = vadd.f32 %v456_v9, %v1332_v60 }
 0x116   :  { %v755_v12 = vand.u32 2147483647, %v674_v10  ;;  %vm513_vm1 = vcmp.gt.f32.partialorder %v237_v7, 0.0  ;;  %v594_v13 = vmul.f32 -0.355, %v237_v7  ;;  %vm514_vm7 = vcmp.gt.f32.partialorder %v335_v8, 0.0 }
 0x117   :  { %v595_v14 = vmul.f32 -0.355, %v335_v8  ;;  %vm539_vm8 = vcmp.gt.f32.partialorder %v457_v11, 0.0  ;;  %v620_v15 = vmul.f32 -0.355, %v457_v11 }
 0x118   :  { %837 = vst.msk [vmem:[%s1716_s3 + $0x178] sm:$0xff] %vm791_vm5, %v755_v12  ;;  %v675_v16 = vsel %vm513_vm1, %v237_v7, %v594_v13  ;;  %v432_v17 = vpop.f32.mrf.mxu2 }
 0x119   :  { %v756_v18 = vand.u32 2147483647, %v675_v16  ;;  %v676_v19 = vsel %vm514_vm7, %v335_v8, %v595_v14  ;;  %v433_v20 = vadd.f32 %v432_v17, %v1332_v60  ;;  %v701_v21 = vsel %vm539_vm8, %v457_v11, %v620_v15 }
 0x11a   :  { %v757_v22 = vand.u32 2147483647, %v676_v19  ;;  %v782_v23 = vand.u32 2147483647, %v701_v21 }
 0x11b   :  { %838 = vst [vmem:[%s1716_s3 + $0x180] sm:$0xff] %v756_v18  ;;  %vm515_vm9 = vcmp.gt.f32.partialorder %v433_v20, 0.0  ;;  %v596_v24 = vmul.f32 -0.355, %v433_v20  ;;  %v239_v25 = vpop.f32.mrf.mxu0  ;;  %v337_v26 = vpop.f32.mrf.mxu1 }
 0x11c   :  { %839 = vst [vmem:[%s1716_s3 + $0x188] sm:$0xff] %v757_v22  ;;  %v240_v27 = vadd.f32 %v239_v25, %v1320_v53  ;;  %v338_v28 = vadd.f32 %v337_v26, %v1322_v54  ;;  %v459_v29 = vpop.f32.mrf.mxu3 }
 0x11d   :  { %v677_v30 = vsel %vm515_vm9, %v433_v20, %v596_v24  ;;  %864 = vst.msk [vmem:[%s1716_s3 + $0x250] sm:$0xff] %vm791_vm5, %v782_v23  ;;  %v460_v31 = vadd.f32 %v459_v29, %v1332_v60 }
 0x11e   :  { %v758_v32 = vand.u32 2147483647, %v677_v30  ;;  %vm516_vm10 = vcmp.gt.f32.partialorder %v240_v27, 0.0  ;;  %v597_v33 = vmul.f32 -0.355, %v240_v27  ;;  %vm517_vm11 = vcmp.gt.f32.partialorder %v338_v28, 0.0 }
 0x11f   :  { %v598_v34 = vmul.f32 -0.355, %v338_v28  ;;  %vm542_vm12 = vcmp.gt.f32.partialorder %v460_v31, 0.0  ;;  %v623_v35 = vmul.f32 -0.355, %v460_v31 }
 0x120   :  { %840 = vst.msk [vmem:[%s1716_s3 + $0x190] sm:$0xff] %vm791_vm5, %v758_v32  ;;  %v678_v36 = vsel %vm516_vm10, %v240_v27, %v597_v33  ;;  %v435_v37 = vpop.f32.mrf.mxu2 }
 0x121   :  { %v759_v38 = vand.u32 2147483647, %v678_v36  ;;  %v679_v39 = vsel %vm517_vm11, %v338_v28, %v598_v34  ;;  %v436_v40 = vadd.f32 %v435_v37, %v1332_v60  ;;  %v704_v41 = vsel %vm542_vm12, %v460_v31, %v623_v35 }
 0x122   :  { %v760_v42 = vand.u32 2147483647, %v679_v39  ;;  %v785_v43 = vand.u32 2147483647, %v704_v41 }
 0x123   :  { %841 = vst [vmem:[%s1716_s3 + $0x198] sm:$0xff] %v759_v38  ;;  %vm518_vm13 = vcmp.gt.f32.partialorder %v436_v40, 0.0  ;;  %v599_v44 = vmul.f32 -0.355, %v436_v40  ;;  %v242_v45 = vpop.f32.mrf.mxu0  ;;  %v340_v46 = vpop.f32.mrf.mxu1 }
 0x124   :  { %842 = vst [vmem:[%s1716_s3 + $0x1a0] sm:$0xff] %v760_v42  ;;  %v243_v47 = vadd.f32 %v242_v45, %v1320_v53  ;;  %v341_v48 = vadd.f32 %v340_v46, %v1322_v54  ;;  %v462_v49 = vpop.f32.mrf.mxu3 }
 0x125   :  { %v680_v50 = vsel %vm518_vm13, %v436_v40, %v599_v44  ;;  %867 = vst.msk [vmem:[%s1716_s3 + $0x268] sm:$0xff] %vm791_vm5, %v785_v43  ;;  %v463_v51 = vadd.f32 %v462_v49, %v1332_v60 }
 0x126   :  { %v761_v52 = vand.u32 2147483647, %v680_v50  ;;  %vm519_vm14 = vcmp.gt.f32.partialorder %v243_v47, 0.0  ;;  %v600_v55 = vmul.f32 -0.355, %v243_v47  ;;  %vm520_vm15 = vcmp.gt.f32.partialorder %v341_v48, 0.0 }
 0x127   :  { %v601_v56 = vmul.f32 -0.355, %v341_v48  ;;  %vm545_vm0 = vcmp.gt.f32.partialorder %v463_v51, 0.0  ;;  %v626_v57 = vmul.f32 -0.355, %v463_v51 }
 0x128   :  { %843 = vst.msk [vmem:[%s1716_s3 + $0x1a8] sm:$0xff] %vm791_vm5, %v761_v52  ;;  %v681_v58 = vsel %vm519_vm14, %v243_v47, %v600_v55  ;;  %v438_v59 = vpop.f32.mrf.mxu2 }
 0x129   :  { %v762_v61 = vand.u32 2147483647, %v681_v58  ;;  %v682_v62 = vsel %vm520_vm15, %v341_v48, %v601_v56  ;;  %v439_v63 = vadd.f32 %v438_v59, %v1332_v60  ;;  %v707_v0 = vsel %vm545_vm0, %v463_v51, %v626_v57 }
 0x12a   :  { %v763_v1 = vand.u32 2147483647, %v682_v62  ;;  %v788_v2 = vand.u32 2147483647, %v707_v0 }
 0x12b   :  { %844 = vst [vmem:[%s1716_s3 + $0x1b0] sm:$0xff] %v762_v61  ;;  %vm521_vm2 = vcmp.gt.f32.partialorder %v439_v63, 0.0  ;;  %v602_v3 = vmul.f32 -0.355, %v439_v63  ;;  %v245_v4 = vpop.f32.mrf.mxu0  ;;  %v343_v5 = vpop.f32.mrf.mxu1 }
 0x12c   :  { %845 = vst [vmem:[%s1716_s3 + $0x1b8] sm:$0xff] %v763_v1  ;;  %v246_v6 = vadd.f32 %v245_v4, %v1320_v53  ;;  %v344_v7 = vadd.f32 %v343_v5, %v1322_v54 }
 0x12d   :  { %v683_v8 = vsel %vm521_vm2, %v439_v63, %v602_v3  ;;  %870 = vst.msk [vmem:[%s1716_s3 + $0x280] sm:$0xff] %vm791_vm5, %v788_v2 }
 0x12e   :  { %v764_v9 = vand.u32 2147483647, %v683_v8  ;;  %vm522_vm3 = vcmp.gt.f32.partialorder %v246_v6, 0.0  ;;  %v603_v10 = vmul.f32 -0.355, %v246_v6  ;;  %vm523_vm4 = vcmp.gt.f32.partialorder %v344_v7, 0.0 }
 0x12f   :  { %v604_v11 = vmul.f32 -0.355, %v344_v7 }
 0x130   :  { %846 = vst.msk [vmem:[%s1716_s3 + $0x1c0] sm:$0xff] %vm791_vm5, %v764_v9  ;;  %v684_v12 = vsel %vm522_vm3, %v246_v6, %v603_v10  ;;  %v441_v13 = vpop.f32.mrf.mxu2 }
 0x131   :  { %v765_v14 = vand.u32 2147483647, %v684_v12  ;;  %v685_v15 = vsel %vm523_vm4, %v344_v7, %v604_v11  ;;  %v442_v16 = vadd.f32 %v441_v13, %v1332_v60 }
 0x132   :  { %v766_v17 = vand.u32 2147483647, %v685_v15 }
 0x133   :  { %847 = vst [vmem:[%s1716_s3 + $0x1c8] sm:$0xff] %v765_v14  ;;  %vm524_vm6 = vcmp.gt.f32.partialorder %v442_v16, 0.0  ;;  %v605_v18 = vmul.f32 -0.355, %v442_v16  ;;  %v248_v19 = vpop.f32.mrf.mxu0  ;;  %v346_v20 = vpop.f32.mrf.mxu1 }
 0x134   :  { %848 = vst [vmem:[%s1716_s3 + $0x1d0] sm:$0xff] %v766_v17  ;;  %v249_v21 = vadd.f32 %v248_v19, %v1320_v53  ;;  %v347_v22 = vadd.f32 %v346_v20, %v1322_v54 }
 0x135   :  { %v686_v23 = vsel %vm524_vm6, %v442_v16, %v605_v18 }
 0x136   :  { %v767_v24 = vand.u32 2147483647, %v686_v23  ;;  %vm525_vm1 = vcmp.gt.f32.partialorder %v249_v21, 0.0  ;;  %v606_v25 = vmul.f32 -0.355, %v249_v21  ;;  %vm526_vm7 = vcmp.gt.f32.partialorder %v347_v22, 0.0 }
 0x137   :  { %v607_v26 = vmul.f32 -0.355, %v347_v22 }
 0x138   :  { %849 = vst.msk [vmem:[%s1716_s3 + $0x1d8] sm:$0xff] %vm791_vm5, %v767_v24  ;;  %v687_v27 = vsel %vm525_vm1, %v249_v21, %v606_v25  ;;  %v444_v28 = vpop.f32.mrf.mxu2 }
 0x139   :  { %v768_v29 = vand.u32 2147483647, %v687_v27  ;;  %v688_v30 = vsel %vm526_vm7, %v347_v22, %v607_v26  ;;  %v445_v31 = vadd.f32 %v444_v28, %v1332_v60 }
 0x13a   :  { %v769_v53 = vand.u32 2147483647, %v688_v30 }
 0x13b   :  { %850 = vst [vmem:[%s1716_s3 + $0x1e0] sm:$0xff] %v768_v29  ;;  %vm527_vm8 = vcmp.gt.f32.partialorder %v445_v31, 0.0  ;;  %v608_v54 = vmul.f32 -0.355, %v445_v31 }
 0x13c   :  { %851 = vst [vmem:[%s1716_s3 + $0x1e8] sm:$0xff] %v769_v53 }
 0x13d   :  { %v689_v32 = vsel %vm527_vm8, %v445_v31, %v608_v54 }
 0x13e   :  { %v770_v33 = vand.u32 2147483647, %v689_v32 }
 0x140   :  { %852 = vst.msk [vmem:[%s1716_s3 + $0x1f0] sm:$0xff] %vm791_vm5, %v770_v33 }

</bundles_post_ra>
